<compile_context>
chip_gen: v7x
topology: tpu7x:2x2x1
jax: 0.10.0
libtpu: 0.0.40
codegen_flags: <defaults>
</compile_context>

<pallas_src>
import functools

import numpy as np
import jax
import jax.numpy as jnp
from jax import lax
from jax.experimental import pallas as pl
from jax.experimental.pallas import tpu as pltpu


LANE = 128  # TPU lane width; fc output is tiled to this for lane-dense stores


# ----------------------------------------------------------------------------
# Fused kernel: embeddings + QKV + masked self-attention + decoder + ReLU + fc
# ----------------------------------------------------------------------------
def fused_hindex_kernel(feat_ref, aut_ref, pap_ref, autm_ref, papm_ref,
                        kpm_ref, wf4_ref, wa4_ref, wp4_ref, b3_ref,
                        wdw_ref, wowd_ref, bd_ref, dmask_ref, gsum_ref,
                        wfc_ref, bfc_ref, out_ref, *, B, S, D, DD):
    """Whole HindexModel forward for all B batch rows in one invocation.

    feat/aut/pap : (B*S, F/DA/DP)  raw input streams
    autm/papm    : (B*S, 1)        author / paper padding masks (per row)
    kpm          : (B, S)          key-padding mask for attention
    wf4/wa4/wp4  : (·, 4D)         [W | W @ Wqkv] fused embedding+QKV weights
    b3           : (3, 4D)         rows = [ba4 ; bp4 ; bf4] fused biases
    wdw          : (D, S*DD)       decoder weight, flatten removed algebraically
    wowd         : (D, S*DD)       Wo @ wdw (residual branch folded in)
    bd           : (1, DD)         decoder bias
    dmask        : (B*S, S*DD)     0/1 block-diagonal selection mask
    gsum         : (B, B*S)        0/1 per-batch group-sum matrix
    wfc/bfc      : (DD,128)/(1,128) fc weight/bias tiled across lanes
    out_ref      : (B, 128)        every lane of row b holds the prediction
    """
    f32 = jnp.float32
    scale = 1.0 / (float(D) ** 0.5)

    autm = autm_ref[...]                                    # (B*S, 1)
    papm = papm_ref[...]                                    # (B*S, 1)
    b3 = b3_ref[...]                                        # (3, 4D)

    # -- fused embeddings + QKV: one matmul stage over ALL B*S rows gives
    #    x | q | k | v in a single lane-dense (B*S, 4D=128) block --
    xqkv = (jnp.dot(feat_ref[...], wf4_ref[...], preferred_element_type=f32)
            + jnp.dot(aut_ref[...] * autm, wa4_ref[...], preferred_element_type=f32)
            + jnp.dot(pap_ref[...] * papm, wp4_ref[...], preferred_element_type=f32)
            + autm * b3[0:1, :] + papm * b3[1:2, :] + b3[2:3, :])

    x = xqkv[:, 0:D]
    q = xqkv[:, D:2 * D]
    k = xqkv[:, 2 * D:3 * D]
    v = xqkv[:, 3 * D:4 * D]

    # Key-padding additive bias, hoisted out of the per-batch loop.
    # (Fully-padded query rows get a uniform distribution over padded keys,
    #  matching the pure-JAX reference semantics.)
    kp_bias = jnp.where(kpm_ref[...] > 0.0, 0.0, -1e9)      # (B, S)

    # -- single-head self-attention with residual; B tiny -> unrolled --
    # TODO(synk): if B grows beyond a handful, move B onto a "parallel" grid
    # axis (engages v7x's second TensorCore) instead of unrolling.
    ctx_rows = []
    for b in range(B):
        qb = q[b * S:(b + 1) * S, :]                        # (S, D)
        kb = k[b * S:(b + 1) * S, :]
        vb = v[b * S:(b + 1) * S, :]
        s_b = lax.dot_general(qb, kb, (((1,), (1,)), ((), ())),   # q @ k^T
                              preferred_element_type=f32) * scale
        s_b = s_b + kp_bias[b:b + 1, :]
        s_b = s_b - jnp.max(s_b, axis=-1, keepdims=True)
        p_b = jnp.exp(s_b)
        p_b = p_b / jnp.sum(p_b, axis=-1, keepdims=True)    # exact reciprocal
        ctx_rows.append(jnp.dot(p_b, vb, preferred_element_type=f32))
    ctx = jnp.concatenate(ctx_rows, axis=0)                 # (B*S, D)

    # -- decoder Linear(S*D -> DD) with the flatten removed algebraically:
    #    enc = x + ctx @ Wo is never materialized;
    #    Y = enc @ wd_wide = x @ wdw + ctx @ (Wo @ wdw)     (two lane-dense pushes)
    #    then keep the diagonal DD-block of each row and fold it to lanes 0:DD
    #    with log2(S) circular lane rolls (XLU slot), then group-sum over the
    #    S rows of each batch with one tiny matmul --
    y = (jnp.dot(x, wdw_ref[...], preferred_element_type=f32)
         + jnp.dot(ctx, wowd_ref[...], preferred_element_type=f32))  # (B*S, S*DD)
    y = y * dmask_ref[...]
    if S & (S - 1) == 0:                      # tree fold (S power of two)
        g = (S * DD) // 2
        while g >= DD:
            y = y + pltpu.roll(y, shift=g, axis=1)
            g //= 2
    else:                                     # generic fold
        acc = y
        for s in range(1, S):
            acc = acc + pltpu.roll(y, shift=s * DD, axis=1)
        y = acc
    folded = y[:, 0:DD]                                     # (B*S, DD)

    dec = jnp.dot(gsum_ref[...], folded,
                  preferred_element_type=f32) + bd_ref[...]  # (B, DD)
    # TODO(synk): nn.Dropout is identity in eval mode; training-mode dropout
    # (pltpu.prng_random_bits mask) intentionally not applied.
    h = jnp.maximum(dec, 0.0)                               # ReLU

    # -- fc batched over B, lane-dense single store --
    out_ref[...] = (jnp.dot(h, wfc_ref[...], preferred_element_type=f32)
                    + bfc_ref[...])                         # (B, 128)


# ----------------------------------------------------------------------------
# One-time parameter fusion (init-time, zero runtime cost per step)
# ----------------------------------------------------------------------------
def fuse_params(params, seq_len, batch):
    S, B = seq_len, batch
    D = params["wf"].shape[1]
    DD = params["wd"].shape[1]
    wqkv = jnp.concatenate([params["wq"], params["wk"], params["wv"]], axis=1)

    def fuse4(w):                      # [W | W @ Wqkv]  -> (·, 4D)
        return jnp.concatenate([w, w @ wqkv], axis=1)

    b3 = jnp.concatenate([fuse4(params["ba"]), fuse4(params["bp"]),
                          fuse4(params["bf"])], axis=0)              # (3, 4D)
    # wd_wide[d, s*DD+e] = wd[s*D+d, e]  (lane-dense decoder weight)
    wdw = params["wd"].reshape(S, D, DD).transpose(1, 0, 2).reshape(D, S * DD)
    wowd = params["wo"] @ wdw                                        # (D, S*DD)
    rows = np.arange(B * S)
    cols = np.arange(S * DD)
    dmask = jnp.asarray(((rows[:, None] % S) == (cols[None, :] // DD))
                        .astype(np.float32))                         # (B*S, S*DD)
    gsum = jnp.asarray(((np.arange(B * S)[None, :] // S)
                        == np.arange(B)[:, None]).astype(np.float32))  # (B, B*S)
    return {"wf4": fuse4(params["wf"]), "wa4": fuse4(params["wa"]),
            "wp4": fuse4(params["wp"]), "b3": b3,
            "wdw": wdw, "wowd": wowd, "bd": params["bd"],
            "dmask": dmask, "gsum": gsum,
            "wfc": jnp.tile(params["wfc"], (1, LANE)),
            "bfc": jnp.tile(params["bfc"], (1, LANE))}


# ----------------------------------------------------------------------------
# Wrapper: full HindexModel.forward (only free bitcast reshapes + pallas_call)
# ----------------------------------------------------------------------------
@jax.jit
def hindex_forward(fused, features, autemb, autemb_mask, papemb, papemb_mask):
    B, S, F = features.shape
    D = fused["wdw"].shape[0]
    DD = fused["bd"].shape[1]
    autm = autemb_mask.astype(jnp.float32).reshape(B * S, 1)
    papm = papemb_mask.astype(jnp.float32).reshape(B * S, 1)
    kpm = papemb_mask.astype(jnp.float32)                    # (B, S)

    kernel = functools.partial(fused_hindex_kernel, B=B, S=S, D=D, DD=DD)
    out_wide = pl.pallas_call(
        kernel,
        out_shape=jax.ShapeDtypeStruct((B, LANE), jnp.float32),
        in_specs=[pl.BlockSpec(memory_space=pltpu.MemorySpace.VMEM)
                  for _ in range(17)],
        out_specs=pl.BlockSpec(memory_space=pltpu.MemorySpace.VMEM),
    )(features.reshape(B * S, F), autemb.reshape(B * S, -1),
      papemb.reshape(B * S, -1), autm, papm, kpm,
      fused["wf4"], fused["wa4"], fused["wp4"], fused["b3"],
      fused["wdw"], fused["wowd"], fused["bd"],
      fused["dmask"], fused["gsum"], fused["wfc"], fused["bfc"])
    return out_wide[:, :1]


# ----------------------------------------------------------------------------
# Pure-JAX reference (for correctness check)
# ----------------------------------------------------------------------------
def hindex_forward_ref(p, features, autemb, autm, papemb, papm):
    B, S, _ = features.shape
    D = p["wf"].shape[1]
    fe = features @ p["wf"] + p["bf"]
    ae = (autemb @ p["wa"] + p["ba"]) * autm[..., None]
    pe = (papemb @ p["wp"] + p["bp"]) * papm[..., None]
    x = fe + ae + pe
    q, k, v = x @ p["wq"], x @ p["wk"], x @ p["wv"]
    scores = jnp.einsum("bqd,bkd->bqk", q, k) / jnp.sqrt(jnp.float32(D))
    scores = scores + jnp.where(papm[:, None, :] > 0.0, 0.0, -1e9)
    attn = jax.nn.softmax(scores, axis=-1)
    enc = x + jnp.einsum("bqk,bkd->bqd", attn, v) @ p["wo"]
    flat = enc.reshape(B, -1)
    h = jnp.maximum(flat @ p["wd"] + p["bd"], 0.0)
    return h @ p["wfc"] + p["bfc"]


if __name__ == "__main__":
    B, S, D = 2, 8, 32        # batch, seq, encoder dim
    F, DA, DP = 16, 24, 24    # raw feature / author-emb / paper-emb dims
    DIM_DECODER = 32

    key = jax.random.PRNGKey(0)
    ks = jax.random.split(key, 16)

    def w(k, shape, scale=0.02):
        return (scale * jax.random.normal(k, shape)).astype(jnp.float32)

    params = {
        "wf": w(ks[0], (F, D)),   "bf": w(ks[1], (1, D)),
        "wa": w(ks[2], (DA, D)),  "ba": w(ks[3], (1, D)),
        "wp": w(ks[4], (DP, D)),  "bp": w(ks[5], (1, D)),
        "wq": w(ks[6], (D, D)),   "wk": w(ks[7], (D, D)),
        "wv": w(ks[8], (D, D)),   "wo": w(ks[9], (D, D)),
        "wd": w(ks[10], (S * D, DIM_DECODER)), "bd": w(ks[11], (1, DIM_DECODER)),
        "wfc": w(ks[12], (DIM_DECODER, 1)),    "bfc": w(ks[13], (1, 1)),
    }

    features = jax.random.normal(ks[14], (B, S, F), dtype=jnp.float32)
    autemb = jax.random.normal(ks[15], (B, S, DA), dtype=jnp.float32)
    papemb = jax.random.normal(jax.random.PRNGKey(1), (B, S, DP),
                               dtype=jnp.float32)

    # masks: 1.0 = valid token, 0.0 = padding
    pos = jnp.arange(S)[None, :]
    autemb_mask = (pos < jnp.array([[6], [8]])).astype(jnp.float32)
    papemb_mask = (pos < jnp.array([[8], [5]])).astype(jnp.float32)

    fused = fuse_params(params, S, B)
    out = hindex_forward(fused, features, autemb, autemb_mask,
                         papemb, papemb_mask)
    out = jax.block_until_ready(out)

    ref = hindex_forward_ref(params, features, autemb, autemb_mask,
                             papemb, papemb_mask)
    assert out.shape == (B, 1)
    assert jnp.allclose(out, ref, atol=1e-4, rtol=1e-4), (out, ref)
    print("KERNEL_OK")
</pallas_src>

<mosaic_0001>
module attributes {stable_mosaic.version = 11 : i64} {
  func.func @fused_hindex_kernel(%arg0: memref<16x16xf32, #tpu.memory_space<vmem>>, %arg1: memref<16x24xf32, #tpu.memory_space<vmem>>, %arg2: memref<16x24xf32, #tpu.memory_space<vmem>>, %arg3: memref<16x1xf32, #tpu.memory_space<vmem>>, %arg4: memref<16x1xf32, #tpu.memory_space<vmem>>, %arg5: memref<2x8xf32, #tpu.memory_space<vmem>>, %arg6: memref<16x128xf32, #tpu.memory_space<vmem>>, %arg7: memref<24x128xf32, #tpu.memory_space<vmem>>, %arg8: memref<24x128xf32, #tpu.memory_space<vmem>>, %arg9: memref<3x128xf32, #tpu.memory_space<vmem>>, %arg10: memref<32x256xf32, #tpu.memory_space<vmem>>, %arg11: memref<32x256xf32, #tpu.memory_space<vmem>>, %arg12: memref<1x32xf32, #tpu.memory_space<vmem>>, %arg13: memref<16x256xf32, #tpu.memory_space<vmem>>, %arg14: memref<2x16xf32, #tpu.memory_space<vmem>>, %arg15: memref<32x128xf32, #tpu.memory_space<vmem>>, %arg16: memref<1x128xf32, #tpu.memory_space<vmem>>, %arg17: memref<2x128xf32, #tpu.memory_space<vmem>>) attributes {dimension_semantics = [], scalar_prefetch = 0 : i64, scratch_operands = 0 : i64, tpu.core_type = #tpu.core_type<tc>} {
    %c0 = arith.constant 0 : index
    %c0_0 = arith.constant 0 : index
    %0 = vector.load %arg3[%c0, %c0_0] : memref<16x1xf32, #tpu.memory_space<vmem>>, vector<16x1xf32>
    %c0_1 = arith.constant 0 : index
    %c0_2 = arith.constant 0 : index
    %1 = vector.load %arg4[%c0_1, %c0_2] : memref<16x1xf32, #tpu.memory_space<vmem>>, vector<16x1xf32>
    %c0_3 = arith.constant 0 : index
    %c0_4 = arith.constant 0 : index
    %2 = vector.load %arg9[%c0_3, %c0_4] : memref<3x128xf32, #tpu.memory_space<vmem>>, vector<3x128xf32>
    %c0_5 = arith.constant 0 : index
    %c0_6 = arith.constant 0 : index
    %3 = vector.load %arg0[%c0_5, %c0_6] : memref<16x16xf32, #tpu.memory_space<vmem>>, vector<16x16xf32>
    %c0_7 = arith.constant 0 : index
    %c0_8 = arith.constant 0 : index
    %4 = vector.load %arg6[%c0_7, %c0_8] : memref<16x128xf32, #tpu.memory_space<vmem>>, vector<16x128xf32>
    %cst = arith.constant dense<0.000000e+00> : vector<16x128xf32>
    %5 = tpu.matmul %3, %4, %cst {dimension_numbers = #tpu.dot_dimension_numbers<[1], [0], [0], [1], [0, 0, 1, 1], [], []>} : vector<16x16xf32>, vector<16x128xf32>, vector<16x128xf32> -> vector<16x128xf32>
    %c0_9 = arith.constant 0 : index
    %c0_10 = arith.constant 0 : index
    %6 = vector.load %arg1[%c0_9, %c0_10] : memref<16x24xf32, #tpu.memory_space<vmem>>, vector<16x24xf32>
    %7 = vector.broadcast %0 : vector<16x1xf32> to vector<16x24xf32>
    %8 = arith.mulf %6, %7 : vector<16x24xf32>
    %c0_11 = arith.constant 0 : index
    %c0_12 = arith.constant 0 : index
    %9 = vector.load %arg7[%c0_11, %c0_12] : memref<24x128xf32, #tpu.memory_space<vmem>>, vector<24x128xf32>
    %cst_13 = arith.constant dense<0.000000e+00> : vector<16x128xf32>
    %10 = tpu.matmul %8, %9, %cst_13 {dimension_numbers = #tpu.dot_dimension_numbers<[1], [0], [0], [1], [0, 0, 1, 1], [], []>} : vector<16x24xf32>, vector<24x128xf32>, vector<16x128xf32> -> vector<16x128xf32>
    %11 = arith.addf %5, %10 : vector<16x128xf32>
    %c0_14 = arith.constant 0 : index
    %c0_15 = arith.constant 0 : index
    %12 = vector.load %arg2[%c0_14, %c0_15] : memref<16x24xf32, #tpu.memory_space<vmem>>, vector<16x24xf32>
    %13 = vector.broadcast %1 : vector<16x1xf32> to vector<16x24xf32>
    %14 = arith.mulf %12, %13 : vector<16x24xf32>
    %c0_16 = arith.constant 0 : index
    %c0_17 = arith.constant 0 : index
    %15 = vector.load %arg8[%c0_16, %c0_17] : memref<24x128xf32, #tpu.memory_space<vmem>>, vector<24x128xf32>
    %cst_18 = arith.constant dense<0.000000e+00> : vector<16x128xf32>
    %16 = tpu.matmul %14, %15, %cst_18 {dimension_numbers = #tpu.dot_dimension_numbers<[1], [0], [0], [1], [0, 0, 1, 1], [], []>} : vector<16x24xf32>, vector<24x128xf32>, vector<16x128xf32> -> vector<16x128xf32>
    %17 = arith.addf %11, %16 : vector<16x128xf32>
    %18 = vector.extract_strided_slice %2 {offsets = [0, 0], sizes = [1, 128], strides = [1, 1]} : vector<3x128xf32> to vector<1x128xf32>
    %19 = vector.broadcast %0 : vector<16x1xf32> to vector<16x128xf32>
    %20 = vector.broadcast %18 : vector<1x128xf32> to vector<16x128xf32>
    %21 = arith.mulf %19, %20 : vector<16x128xf32>
    %22 = arith.addf %17, %21 : vector<16x128xf32>
    %23 = vector.extract_strided_slice %2 {offsets = [1, 0], sizes = [1, 128], strides = [1, 1]} : vector<3x128xf32> to vector<1x128xf32>
    %24 = vector.broadcast %1 : vector<16x1xf32> to vector<16x128xf32>
    %25 = vector.broadcast %23 : vector<1x128xf32> to vector<16x128xf32>
    %26 = arith.mulf %24, %25 : vector<16x128xf32>
    %27 = arith.addf %22, %26 : vector<16x128xf32>
    %28 = vector.extract_strided_slice %2 {offsets = [2, 0], sizes = [1, 128], strides = [1, 1]} : vector<3x128xf32> to vector<1x128xf32>
    %29 = vector.broadcast %28 : vector<1x128xf32> to vector<16x128xf32>
    %30 = arith.addf %27, %29 : vector<16x128xf32>
    %31 = vector.extract_strided_slice %30 {offsets = [0, 0], sizes = [16, 32], strides = [1, 1]} : vector<16x128xf32> to vector<16x32xf32>
    %32 = vector.extract_strided_slice %30 {offsets = [0, 32], sizes = [16, 32], strides = [1, 1]} : vector<16x128xf32> to vector<16x32xf32>
    %33 = vector.extract_strided_slice %30 {offsets = [0, 64], sizes = [16, 32], strides = [1, 1]} : vector<16x128xf32> to vector<16x32xf32>
    %34 = vector.extract_strided_slice %30 {offsets = [0, 96], sizes = [16, 32], strides = [1, 1]} : vector<16x128xf32> to vector<16x32xf32>
    %c0_19 = arith.constant 0 : index
    %c0_20 = arith.constant 0 : index
    %35 = vector.load %arg5[%c0_19, %c0_20] : memref<2x8xf32, #tpu.memory_space<vmem>>, vector<2x8xf32>
    %cst_21 = arith.constant 0.000000e+00 : f32
    %36 = vector.broadcast %cst_21 : f32 to vector<2x8xf32>
    %37 = arith.cmpf ogt, %35, %36 : vector<2x8xf32>
    %cst_22 = arith.constant 0.000000e+00 : f32
    %cst_23 = arith.constant -1.000000e+09 : f32
    %38 = vector.broadcast %cst_22 : f32 to vector<2x8xf32>
    %39 = vector.broadcast %cst_23 : f32 to vector<2x8xf32>
    %40 = arith.select %37, %38, %39 : vector<2x8xi1>, vector<2x8xf32>
    %41 = vector.extract_strided_slice %32 {offsets = [0, 0], sizes = [8, 32], strides = [1, 1]} : vector<16x32xf32> to vector<8x32xf32>
    %42 = vector.extract_strided_slice %33 {offsets = [0, 0], sizes = [8, 32], strides = [1, 1]} : vector<16x32xf32> to vector<8x32xf32>
    %43 = vector.extract_strided_slice %34 {offsets = [0, 0], sizes = [8, 32], strides = [1, 1]} : vector<16x32xf32> to vector<8x32xf32>
    %cst_24 = arith.constant dense<0.000000e+00> : vector<8x8xf32>
    %44 = tpu.matmul %41, %42, %cst_24 {dimension_numbers = #tpu.dot_dimension_numbers<[1], [1], [0], [0], [0, 0, 1, 0], [], []>} : vector<8x32xf32>, vector<8x32xf32>, vector<8x8xf32> -> vector<8x8xf32>
    %cst_25 = arith.constant 0.176776692 : f32
    %45 = vector.broadcast %cst_25 : f32 to vector<8x8xf32>
    %46 = arith.mulf %44, %45 : vector<8x8xf32>
    %47 = vector.extract_strided_slice %40 {offsets = [0, 0], sizes = [1, 8], strides = [1, 1]} : vector<2x8xf32> to vector<1x8xf32>
    %48 = vector.broadcast %47 : vector<1x8xf32> to vector<8x8xf32>
    %49 = arith.addf %46, %48 : vector<8x8xf32>
    %cst_26 = arith.constant dense<0xFF800000> : vector<8xf32>
    %50 = vector.multi_reduction <maximumf>, %49, %cst_26 [1] : vector<8x8xf32> to vector<8xf32>
    %51 = vector.shape_cast %50 : vector<8xf32> to vector<8x1xf32>
    %52 = vector.broadcast %51 : vector<8x1xf32> to vector<8x8xf32>
    %53 = arith.subf %49, %52 : vector<8x8xf32>
    %54 = math.exp %53 : vector<8x8xf32>
    %cst_27 = arith.constant dense<0.000000e+00> : vector<8xf32>
    %55 = vector.multi_reduction <add>, %54, %cst_27 [1] : vector<8x8xf32> to vector<8xf32>
    %56 = vector.shape_cast %55 : vector<8xf32> to vector<8x1xf32>
    %57 = vector.broadcast %56 : vector<8x1xf32> to vector<8x8xf32>
    %58 = arith.divf %54, %57 : vector<8x8xf32>
    %cst_28 = arith.constant dense<0.000000e+00> : vector<8x32xf32>
    %59 = tpu.matmul %58, %43, %cst_28 {dimension_numbers = #tpu.dot_dimension_numbers<[1], [0], [0], [1], [0, 0, 1, 1], [], []>} : vector<8x8xf32>, vector<8x32xf32>, vector<8x32xf32> -> vector<8x32xf32>
    %60 = vector.extract_strided_slice %32 {offsets = [8, 0], sizes = [8, 32], strides = [1, 1]} : vector<16x32xf32> to vector<8x32xf32>
    %61 = vector.extract_strided_slice %33 {offsets = [8, 0], sizes = [8, 32], strides = [1, 1]} : vector<16x32xf32> to vector<8x32xf32>
    %62 = vector.extract_strided_slice %34 {offsets = [8, 0], sizes = [8, 32], strides = [1, 1]} : vector<16x32xf32> to vector<8x32xf32>
    %cst_29 = arith.constant dense<0.000000e+00> : vector<8x8xf32>
    %63 = tpu.matmul %60, %61, %cst_29 {dimension_numbers = #tpu.dot_dimension_numbers<[1], [1], [0], [0], [0, 0, 1, 0], [], []>} : vector<8x32xf32>, vector<8x32xf32>, vector<8x8xf32> -> vector<8x8xf32>
    %cst_30 = arith.constant 0.176776692 : f32
    %64 = vector.broadcast %cst_30 : f32 to vector<8x8xf32>
    %65 = arith.mulf %63, %64 : vector<8x8xf32>
    %66 = vector.extract_strided_slice %40 {offsets = [1, 0], sizes = [1, 8], strides = [1, 1]} : vector<2x8xf32> to vector<1x8xf32>
    %67 = vector.broadcast %66 : vector<1x8xf32> to vector<8x8xf32>
    %68 = arith.addf %65, %67 : vector<8x8xf32>
    %cst_31 = arith.constant dense<0xFF800000> : vector<8xf32>
    %69 = vector.multi_reduction <maximumf>, %68, %cst_31 [1] : vector<8x8xf32> to vector<8xf32>
    %70 = vector.shape_cast %69 : vector<8xf32> to vector<8x1xf32>
    %71 = vector.broadcast %70 : vector<8x1xf32> to vector<8x8xf32>
    %72 = arith.subf %68, %71 : vector<8x8xf32>
    %73 = math.exp %72 : vector<8x8xf32>
    %cst_32 = arith.constant dense<0.000000e+00> : vector<8xf32>
    %74 = vector.multi_reduction <add>, %73, %cst_32 [1] : vector<8x8xf32> to vector<8xf32>
    %75 = vector.shape_cast %74 : vector<8xf32> to vector<8x1xf32>
    %76 = vector.broadcast %75 : vector<8x1xf32> to vector<8x8xf32>
    %77 = arith.divf %73, %76 : vector<8x8xf32>
    %cst_33 = arith.constant dense<0.000000e+00> : vector<8x32xf32>
    %78 = tpu.matmul %77, %62, %cst_33 {dimension_numbers = #tpu.dot_dimension_numbers<[1], [0], [0], [1], [0, 0, 1, 1], [], []>} : vector<8x8xf32>, vector<8x32xf32>, vector<8x32xf32> -> vector<8x32xf32>
    %79 = tpu.concatenate %59, %78 in 0 : vector<8x32xf32>, vector<8x32xf32> -> vector<16x32xf32>
    %c0_34 = arith.constant 0 : index
    %c0_35 = arith.constant 0 : index
    %80 = vector.load %arg10[%c0_34, %c0_35] : memref<32x256xf32, #tpu.memory_space<vmem>>, vector<32x256xf32>
    %cst_36 = arith.constant dense<0.000000e+00> : vector<16x256xf32>
    %81 = tpu.matmul %31, %80, %cst_36 {dimension_numbers = #tpu.dot_dimension_numbers<[1], [0], [0], [1], [0, 0, 1, 1], [], []>} : vector<16x32xf32>, vector<32x256xf32>, vector<16x256xf32> -> vector<16x256xf32>
    %c0_37 = arith.constant 0 : index
    %c0_38 = arith.constant 0 : index
    %82 = vector.load %arg11[%c0_37, %c0_38] : memref<32x256xf32, #tpu.memory_space<vmem>>, vector<32x256xf32>
    %cst_39 = arith.constant dense<0.000000e+00> : vector<16x256xf32>
    %83 = tpu.matmul %79, %82, %cst_39 {dimension_numbers = #tpu.dot_dimension_numbers<[1], [0], [0], [1], [0, 0, 1, 1], [], []>} : vector<16x32xf32>, vector<32x256xf32>, vector<16x256xf32> -> vector<16x256xf32>
    %84 = arith.addf %81, %83 : vector<16x256xf32>
    %c0_40 = arith.constant 0 : index
    %c0_41 = arith.constant 0 : index
    %85 = vector.load %arg13[%c0_40, %c0_41] : memref<16x256xf32, #tpu.memory_space<vmem>>, vector<16x256xf32>
    %86 = arith.mulf %84, %85 : vector<16x256xf32>
    %c128_i32 = arith.constant 128 : i32
    %87 = tpu.dynamic_rotate %86 by %c128_i32 dim 1 : vector<16x256xf32>, i32 -> vector<16x256xf32>
    %88 = arith.addf %86, %87 : vector<16x256xf32>
    %c64_i32 = arith.constant 64 : i32
    %89 = tpu.dynamic_rotate %88 by %c64_i32 dim 1 : vector<16x256xf32>, i32 -> vector<16x256xf32>
    %90 = arith.addf %88, %89 : vector<16x256xf32>
    %c32_i32 = arith.constant 32 : i32
    %91 = tpu.dynamic_rotate %90 by %c32_i32 dim 1 : vector<16x256xf32>, i32 -> vector<16x256xf32>
    %92 = arith.addf %90, %91 : vector<16x256xf32>
    %93 = vector.extract_strided_slice %92 {offsets = [0, 0], sizes = [16, 32], strides = [1, 1]} : vector<16x256xf32> to vector<16x32xf32>
    %c0_42 = arith.constant 0 : index
    %c0_43 = arith.constant 0 : index
    %94 = vector.load %arg14[%c0_42, %c0_43] : memref<2x16xf32, #tpu.memory_space<vmem>>, vector<2x16xf32>
    %cst_44 = arith.constant dense<0.000000e+00> : vector<2x32xf32>
    %95 = tpu.matmul %94, %93, %cst_44 {dimension_numbers = #tpu.dot_dimension_numbers<[1], [0], [0], [1], [0, 0, 1, 1], [], []>} : vector<2x16xf32>, vector<16x32xf32>, vector<2x32xf32> -> vector<2x32xf32>
    %c0_45 = arith.constant 0 : index
    %c0_46 = arith.constant 0 : index
    %96 = vector.load %arg12[%c0_45, %c0_46] : memref<1x32xf32, #tpu.memory_space<vmem>>, vector<1x32xf32>
    %97 = vector.broadcast %96 : vector<1x32xf32> to vector<2x32xf32>
    %98 = arith.addf %95, %97 : vector<2x32xf32>
    %cst_47 = arith.constant 0.000000e+00 : f32
    %99 = vector.broadcast %cst_47 : f32 to vector<2x32xf32>
    %100 = arith.maximumf %98, %99 : vector<2x32xf32>
    %c0_48 = arith.constant 0 : index
    %c0_49 = arith.constant 0 : index
    %101 = vector.load %arg15[%c0_48, %c0_49] : memref<32x128xf32, #tpu.memory_space<vmem>>, vector<32x128xf32>
    %cst_50 = arith.constant dense<0.000000e+00> : vector<2x128xf32>
    %102 = tpu.matmul %100, %101, %cst_50 {dimension_numbers = #tpu.dot_dimension_numbers<[1], [0], [0], [1], [0, 0, 1, 1], [], []>} : vector<2x32xf32>, vector<32x128xf32>, vector<2x128xf32> -> vector<2x128xf32>
    %c0_51 = arith.constant 0 : index
    %c0_52 = arith.constant 0 : index
    %103 = vector.load %arg16[%c0_51, %c0_52] : memref<1x128xf32, #tpu.memory_space<vmem>>, vector<1x128xf32>
    %104 = vector.broadcast %103 : vector<1x128xf32> to vector<2x128xf32>
    %105 = arith.addf %102, %104 : vector<2x128xf32>
    %c0_53 = arith.constant 0 : index
    %c0_54 = arith.constant 0 : index
    %106 = vector.load %arg17[%c0_53, %c0_54] : memref<2x128xf32, #tpu.memory_space<vmem>>, vector<2x128xf32>
    tpu.vector_store %arg17[%c0_53, %c0_54], %105 {strides = array<i32>} : memref<2x128xf32, #tpu.memory_space<vmem>>, vector<2x128xf32>,
    return
  }
}

</mosaic_0001>

<bundles_post_ra>
// kernel: hindex_forward.1
= control target key start
LH: loop header
LB: loop body
LE: loop exit
PB: predicated region body
PF: predicated region fallthrough
CT: control target
= control target key end

     0   :  { %s2076_s0 = inlined_call_operand.vmem [shape: f32[16,16], index: 0, kind: input, shape index: {}]   ;;  %s2077_s1 = inlined_call_operand.hbm [shape: f32[16,24], index: 1, kind: input, shape index: {}]   ;;  %s2078_s2 = inlined_call_operand.vmem [shape: f32[16,24], index: 2, kind: input, shape index: {}]   ;;  %s2079_s3 = inlined_call_operand.vmem [shape: f32[16,1], index: 3, kind: input, shape index: {}]   ;;  %s2080_s4 = inlined_call_operand.vmem [shape: f32[16,1], index: 4, kind: input, shape index: {}]   ;;  %s2081_s5 = inlined_call_operand.vmem [shape: f32[2,8], index: 5, kind: input, shape index: {}]   ;;  %s2082_s6 = inlined_call_operand.hbm [shape: f32[16,128], index: 6, kind: input, shape index: {}]   ;;  %s2083_s7 = inlined_call_operand.hbm [shape: f32[24,128], index: 7, kind: input, shape index: {}]   ;;  %s2084_s8 = inlined_call_operand.hbm [shape: f32[24,128], index: 8, kind: input, shape index: {}]   ;;  %s2085_s9 = inlined_call_operand.hbm [shape: f32[3,128], index: 9, kind: input, shape index: {}]   ;;  %s2086_s10 = inlined_call_operand.vmem [shape: f32[32,256], index: 10, kind: input, shape index: {}]   ;;  %s2087_s11 = inlined_call_operand.hbm [shape: f32[32,256], index: 11, kind: input, shape index: {}]   ;;  %s2088_s12 = inlined_call_operand.hbm [shape: f32[1,32], index: 12, kind: input, shape index: {}]   ;;  %s2089_s13 = inlined_call_operand.hbm [shape: f32[16,256], index: 13, kind: input, shape index: {}]   ;;  %s2090_s14 = inlined_call_operand.hbm [shape: f32[2,16], index: 14, kind: input, shape index: {}]   ;;  %s2091_s15 = inlined_call_operand.hbm [shape: f32[32,128], index: 15, kind: input, shape index: {}]   ;;  %s2092_s16 = inlined_call_operand.hbm [shape: f32[1,128], index: 16, kind: input, shape index: {}]   ;;  %s2093_s17 = inlined_call_operand.vmem [shape: f32[2,128], index: 17, kind: output, shape index: {}]  }
   0x1   :  { %2098 = sst [smem:[#allocation25_spill]] %s2076_s0 }
   0x2   :  { %2099 = sst [smem:[#allocation26_spill]] %s2077_s1 }
   0x3   :  { %22 = vsyncpa [#allocation3], 0 }
   0x4   :  { %23 = vsyncpa [#allocation5], 0 }
   0x5   :  { %24 = vsyncpa [#allocation8], 0 }
   0x6   :  { %25 = vsyncpa [#allocation11], 0 }
   0x7   :  { %26 = vsyncpa [#allocation14], 0 }
   0x8   :  { %27 = vsyncpa [#allocation17], 0  ;;  %s1684_s24 = smov [#allocation4]   ;;  %s1685_s26 = smov [#allocation7]  }
   0x9   :  { %s55_s25 = sshll.u32 %s1684_s24, 4  ;;  %s79_s27 = sshll.u32 %s1685_s26, 4  ;;  %s56_s25 = int_to_ptr.vmem [resolvable:$true] %s55_s25  ;;  %s1797_s27 = int_to_ptr.vmem [resolvable:$true] %s79_s27 }
   0xa   :  { %s1430_s0 = scalar_lea.hbm %s2082_s6, 256 }
   0xb   :  { %p1431_p0 = scmp.ne.s32.totalorder %s2082_s6, %s1430_s0  ;;  %p1434_p1 = scmp.lt.u32.totalorder %s1430_s0, %s2082_s6 }
   0xd   :  { %p1436_p2 = pnand %p1434_p1, %p1431_p0 }
   0xf   :  { %1439 = shalt.err (!%p1436_p2)
}
  0x10   :  { %s1440_s20 = scalar_lea.vmem %s56_s25, 256  ;;  %p1445_p4 = scmp.lt.s32.totalorder %s56_s25, %s56_s25 }
  0x11   :  { %p1441_p3 = scmp.ne.s32.totalorder %s56_s25, %s1440_s20  ;;  %p1446_p5 = scmp.lt.s32.totalorder %s1440_s20, %s1440_s20 }
  0x13   :  { %p1447_p6 = por %p1446_p5, %p1445_p4 }
  0x15   :  { %p1448_p7 = pnand %p1447_p6, %p1441_p3 }
  0x17   :  { %1451 = shalt.err (!%p1448_p7)
}
  0x18   :  { %s2096_s21 = smov 128   ;;  %s1687_s22 = smov 8  }
  0x19   :  { %61 = dma.hbm_to_vmem [thread:$0]  %s2082_s6, 256, %s56_s25, [#allocation5], %s2096_s21, %s2096_s21, %s1687_s22  }
  0x1a   :  { %s1452_s29 = scalar_lea.hbm %s2084_s8, 384 }
  0x1b   :  { %p1453_p8 = scmp.ne.s32.totalorder %s2084_s8, %s1452_s29  ;;  %p1456_p9 = scmp.lt.u32.totalorder %s1452_s29, %s2084_s8 }
  0x1d   :  { %p1458_p10 = pnand %p1456_p9, %p1453_p8 }
  0x1f   :  { %1461 = shalt.err (!%p1458_p10)
}
  0x20   :  { %s1462_s1 = scalar_lea.vmem %s1797_s27, 384  ;;  %p1467_p12 = scmp.lt.s32.totalorder %s1797_s27, %s1797_s27 }
  0x21   :  { %p1463_p11 = scmp.ne.s32.totalorder %s1797_s27, %s1462_s1  ;;  %p1468_p13 = scmp.lt.s32.totalorder %s1462_s1, %s1462_s1 }
  0x23   :  { %p1469_p0 = por %p1468_p13, %p1467_p12 }
  0x25   :  { %p1470_p1 = pnand %p1469_p0, %p1463_p11 }
  0x27   :  { %1473 = shalt.err (!%p1470_p1)
}
  0x28   :  { %85 = dma.hbm_to_vmem [thread:$0]  %s2084_s8, 384, %s1797_s27, [#allocation8], %s2096_s21, %s2096_s21, %s1687_s22  }
  0x29   :  { %s1688_s20 = smov [#allocation10]   ;;  %s1474_s28 = scalar_lea.hbm %s2087_s11, 1024 }
  0x2a   :  { %s103_s23 = sshll.u32 %s1688_s20, 4  ;;  %p1475_p2 = scmp.ne.s32.totalorder %s2087_s11, %s1474_s28  ;;  %s104_s23 = int_to_ptr.vmem [resolvable:$true] %s103_s23 }
  0x2b   :  { %p1478_p3 = scmp.lt.u32.totalorder %s1474_s28, %s2087_s11 }
  0x2d   :  { %p1480_p4 = pnand %p1478_p3, %p1475_p2 }
  0x2f   :  { %1483 = shalt.err (!%p1480_p4)
}
  0x30   :  { %s1484_s19 = scalar_lea.vmem %s104_s23, 1024  ;;  %p1489_p6 = scmp.lt.s32.totalorder %s104_s23, %s104_s23 }
  0x31   :  { %p1485_p5 = scmp.ne.s32.totalorder %s104_s23, %s1484_s19  ;;  %p1490_p7 = scmp.lt.s32.totalorder %s1484_s19, %s1484_s19 }
  0x33   :  { %p1491_p8 = por %p1490_p7, %p1489_p6 }
  0x35   :  { %p1492_p9 = pnand %p1491_p8, %p1485_p5 }
  0x37   :  { %1495 = shalt.err (!%p1492_p9)
}
  0x38   :  { %s1689_s8 = smov 256   ;;  %s1690_s27 = smov 16  }
  0x39   :  { %109 = dma.hbm_to_vmem [thread:$0]  %s2087_s11, 1024, %s104_s23, [#allocation11], %s1689_s8, %s1689_s8, %s1690_s27  }
  0x3a   :  { %s1691_s25 = smov [#allocation13]   ;;  %s1692_s24 = smov [#allocation16]  }
  0x3b   :  { %s125_s20 = sshll.u32 %s1691_s25, 4  ;;  %s147_s26 = sshll.u32 %s1692_s24, 4  ;;  %s126_s20 = int_to_ptr.vmem [resolvable:$true] %s125_s20  ;;  %s148_s26 = int_to_ptr.vmem [resolvable:$true] %s147_s26 }
  0x3c   :  { %s1496_s0 = scalar_lea.hbm %s2089_s13, 512 }
  0x3d   :  { %p1497_p10 = scmp.ne.s32.totalorder %s2089_s13, %s1496_s0  ;;  %p1500_p11 = scmp.lt.u32.totalorder %s1496_s0, %s2089_s13 }
  0x3f   :  { %p1502_p12 = pnand %p1500_p11, %p1497_p10 }
  0x41   :  { %1505 = shalt.err (!%p1502_p12)
}
  0x42   :  { %s1506_s11 = scalar_lea.vmem %s126_s20, 512  ;;  %p1511_p0 = scmp.lt.s32.totalorder %s126_s20, %s126_s20 }
  0x43   :  { %p1507_p13 = scmp.ne.s32.totalorder %s126_s20, %s1506_s11  ;;  %p1512_p1 = scmp.lt.s32.totalorder %s1506_s11, %s1506_s11 }
  0x45   :  { %p1513_p2 = por %p1512_p1, %p1511_p0 }
  0x47   :  { %p1514_p3 = pnand %p1513_p2, %p1507_p13 }
  0x49   :  { %1517 = shalt.err (!%p1514_p3)
}
  0x4a   :  { %131 = dma.hbm_to_vmem [thread:$0]  %s2089_s13, 512, %s126_s20, [#allocation14], %s1689_s8, %s1689_s8, %s1690_s27  }
  0x4b   :  { %s1518_s24 = scalar_lea.hbm %s2091_s15, 512 }
  0x4c   :  { %p1519_p4 = scmp.ne.s32.totalorder %s2091_s15, %s1518_s24  ;;  %p1522_p5 = scmp.lt.u32.totalorder %s1518_s24, %s2091_s15 }
  0x4e   :  { %p1524_p6 = pnand %p1522_p5, %p1519_p4 }
  0x50   :  { %1527 = shalt.err (!%p1524_p6)
}
  0x51   :  { %s1528_s30 = scalar_lea.vmem %s148_s26, 512  ;;  %p1533_p8 = scmp.lt.s32.totalorder %s148_s26, %s148_s26 }
  0x52   :  { %p1529_p7 = scmp.ne.s32.totalorder %s148_s26, %s1528_s30  ;;  %p1534_p9 = scmp.lt.s32.totalorder %s1528_s30, %s1528_s30 }
  0x54   :  { %p1535_p10 = por %p1534_p9, %p1533_p8 }
  0x56   :  { %p1536_p11 = pnand %p1535_p10, %p1529_p7 }
  0x58   :  { %1539 = shalt.err (!%p1536_p11)
}
  0x59   :  { %s2100_s13 = smov 128   ;;  %s1693_s20 = smov [#allocation2]  }
  0x5a   :  { %153 = dma.hbm_to_vmem [thread:$0]  %s2091_s15, 512, %s148_s26, [#allocation17], %s2100_s13, %s2100_s13, %s1687_s22  }
  0x5b   :  { %s35_s18 = sshll.u32 %s1693_s20, 4  ;;  %s1694_s19 = smov [#allocation6]   ;;  %s36_s18 = int_to_ptr.vmem [resolvable:$true] %s35_s18 }
  0x5c   :  { %s67_s11 = sshll.u32 %s1694_s19, 4  ;;  %s2101_s6 = sld [smem:[#allocation26_spill]]  ;;  %s68_s11 = int_to_ptr.vmem [resolvable:$true] %s67_s11 }
  0x62   :  { %s1540_s25 = scalar_lea.hbm %s2101_s6, 256 }
  0x63   :  { %p1541_p12 = scmp.ne.s32.totalorder %s2101_s6, %s1540_s25  ;;  %p1544_p13 = scmp.lt.u32.totalorder %s1540_s25, %s2101_s6 }
  0x65   :  { %p1546_p0 = pnand %p1544_p13, %p1541_p12 }
  0x67   :  { %1549 = shalt.err (!%p1546_p0)
}
  0x68   :  { %s1550_s15 = scalar_lea.vmem %s36_s18, 256  ;;  %p1555_p2 = scmp.lt.s32.totalorder %s36_s18, %s36_s18 }
  0x69   :  { %p1551_p1 = scmp.ne.s32.totalorder %s36_s18, %s1550_s15  ;;  %p1556_p3 = scmp.lt.s32.totalorder %s1550_s15, %s1550_s15 }
  0x6b   :  { %p1557_p4 = por %p1556_p3, %p1555_p2 }
  0x6d   :  { %p1558_p5 = pnand %p1557_p4, %p1551_p1 }
  0x6f   :  { %1561 = shalt.err (!%p1558_p5)
}
  0x70   :  { %41 = dma.hbm_to_vmem [thread:$0]  %s2101_s6, 256, %s36_s18, [#allocation3], %s2100_s13, %s2100_s13, %s1687_s22  }
  0x71   :  { %s1562_s27 = scalar_lea.hbm %s2083_s7, 384 }
  0x72   :  { %p1563_p6 = scmp.ne.s32.totalorder %s2083_s7, %s1562_s27  ;;  %p1566_p7 = scmp.lt.u32.totalorder %s1562_s27, %s2083_s7 }
  0x74   :  { %p1568_p8 = pnand %p1566_p7, %p1563_p6 }
  0x76   :  { %1571 = shalt.err (!%p1568_p8)
}
  0x77   :  { %s1572_s25 = scalar_lea.vmem %s68_s11, 384  ;;  %p1577_p10 = scmp.lt.s32.totalorder %s68_s11, %s68_s11 }
  0x78   :  { %p1573_p9 = scmp.ne.s32.totalorder %s68_s11, %s1572_s25  ;;  %p1578_p11 = scmp.lt.s32.totalorder %s1572_s25, %s1572_s25 }
  0x7a   :  { %p1579_p12 = por %p1578_p11, %p1577_p10 }
  0x7c   :  { %p1580_p13 = pnand %p1579_p12, %p1573_p9 }
  0x7e   :  { %1583 = shalt.err (!%p1580_p13)
}
  0x7f   :  { %73 = dma.hbm_to_vmem [thread:$0]  %s2083_s7, 384, %s68_s11, [#allocation5], %s2100_s13, %s2100_s13, %s1687_s22  }
  0x80   :  { %s1695_s24 = smov [#allocation9]   ;;  %s1696_s28 = smov [#allocation12]  }
  0x81   :  { %s92_s21 = sshll.u32 %s1695_s24, 4  ;;  %s116_s29 = sshll.u32 %s1696_s28, 4  ;;  %s93_s21 = int_to_ptr.vmem [resolvable:$true] %s92_s21  ;;  %s117_s29 = int_to_ptr.vmem [resolvable:$true] %s116_s29 }
  0x82   :  { %s1584_s0 = scalar_lea.hbm %s2085_s9, 64 }
  0x83   :  { %p1585_p0 = scmp.ne.s32.totalorder %s2085_s9, %s1584_s0  ;;  %p1588_p1 = scmp.lt.u32.totalorder %s1584_s0, %s2085_s9 }
  0x85   :  { %p1590_p2 = pnand %p1588_p1, %p1585_p0 }
  0x87   :  { %1593 = shalt.err (!%p1590_p2)
}
  0x88   :  { %s1594_s7 = scalar_lea.vmem %s93_s21, 64  ;;  %p1599_p4 = scmp.lt.s32.totalorder %s93_s21, %s93_s21 }
  0x89   :  { %p1595_p3 = scmp.ne.s32.totalorder %s93_s21, %s1594_s7  ;;  %p1600_p5 = scmp.lt.s32.totalorder %s1594_s7, %s1594_s7 }
  0x8b   :  { %p1601_p6 = por %p1600_p5, %p1599_p4 }
  0x8d   :  { %p1602_p7 = pnand %p1601_p6, %p1595_p3 }
  0x8f   :  { %1605 = shalt.err (!%p1602_p7)
}
  0x90   :  { %95 = dma.hbm_to_vmem [thread:$0]  %s2085_s9, 64, %s93_s21, [#allocation8]  }
  0x91   :  { %s1606_s23 = scalar_lea.hbm %s2088_s12, 16 }
  0x92   :  { %p1607_p8 = scmp.ne.s32.totalorder %s2088_s12, %s1606_s23  ;;  %p1610_p9 = scmp.lt.u32.totalorder %s1606_s23, %s2088_s12 }
  0x94   :  { %p1612_p10 = pnand %p1610_p9, %p1607_p8 }
  0x96   :  { %1615 = shalt.err (!%p1612_p10)
}
  0x97   :  { %s1616_s24 = scalar_lea.vmem %s117_s29, 16  ;;  %s1620_s28 = scalar_lea.vmem %s117_s29, 32 }
  0x98   :  { %p1617_p11 = scmp.ne.s32.totalorder %s117_s29, %s1616_s24  ;;  %p1621_p12 = scmp.lt.s32.totalorder %s117_s29, %s117_s29 }
  0x99   :  { %p1622_p13 = scmp.lt.s32.totalorder %s1620_s28, %s1616_s24 }
  0x9b   :  { %p1623_p0 = por %p1622_p13, %p1621_p12 }
  0x9d   :  { %p1624_p1 = pnand %p1623_p0, %p1617_p11 }
  0x9f   :  { %1627 = shalt.err (!%p1624_p1)
}
  0xa0   :  { %119 = dma.hbm_to_vmem [thread:$0]  %s2088_s12, 16, %s117_s29, [#allocation11]  }
  0xa1   :  { %s1697_s15 = smov [#allocation15]   ;;  %s1698_s0 = smov [#allocation18]  }
  0xa2   :  { %s138_s26 = sshll.u32 %s1697_s15, 4  ;;  %s160_s30 = sshll.u32 %s1698_s0, 4  ;;  %s139_s26 = int_to_ptr.vmem [resolvable:$true] %s138_s26  ;;  %s161_s30 = int_to_ptr.vmem [resolvable:$true] %s160_s30 }
  0xa3   :  { %s1628_s20 = scalar_lea.hbm %s2090_s14, 32 }
  0xa4   :  { %p1629_p2 = scmp.ne.s32.totalorder %s2090_s14, %s1628_s20  ;;  %p1632_p3 = scmp.lt.u32.totalorder %s1628_s20, %s2090_s14 }
  0xa6   :  { %p1634_p4 = pnand %p1632_p3, %p1629_p2 }
  0xa8   :  { %1637 = shalt.err (!%p1634_p4)
}
  0xa9   :  { %s1638_s12 = scalar_lea.vmem %s139_s26, 32  ;;  %p1643_p6 = scmp.lt.s32.totalorder %s139_s26, %s139_s26 }
  0xaa   :  { %p1639_p5 = scmp.ne.s32.totalorder %s139_s26, %s1638_s12  ;;  %p1644_p7 = scmp.lt.s32.totalorder %s1638_s12, %s1638_s12 }
  0xac   :  { %p1645_p8 = por %p1644_p7, %p1643_p6 }
  0xae   :  { %p1646_p9 = pnand %p1645_p8, %p1639_p5 }
  0xb0   :  { %1649 = shalt.err (!%p1646_p9)
}
  0xb1   :  { %141 = dma.hbm_to_vmem [thread:$0]  %s2090_s14, 32, %s139_s26, [#allocation14]  }
  0xb2   :  { %s1650_s25 = scalar_lea.hbm %s2092_s16, 16 }
  0xb3   :  { %p1651_p10 = scmp.ne.s32.totalorder %s2092_s16, %s1650_s25  ;;  %p1654_p11 = scmp.lt.u32.totalorder %s1650_s25, %s2092_s16 }
  0xb5   :  { %p1656_p12 = pnand %p1654_p11, %p1651_p10 }
  0xb7   :  { %1659 = shalt.err (!%p1656_p12)
}
  0xb8   :  { %s1660_s9 = scalar_lea.vmem %s161_s30, 16  ;;  %s1664_s21 = scalar_lea.vmem %s161_s30, 32 }
  0xb9   :  { %p1661_p13 = scmp.ne.s32.totalorder %s161_s30, %s1660_s9  ;;  %p1665_p0 = scmp.lt.s32.totalorder %s161_s30, %s161_s30 }
  0xba   :  { %p1666_p1 = scmp.lt.s32.totalorder %s1664_s21, %s1660_s9 }
  0xbc   :  { %p1667_p2 = por %p1666_p1, %p1665_p0 }
  0xbe   :  { %p1668_p3 = pnand %p1667_p2, %p1661_p13 }
  0xc0   :  { %1671 = shalt.err (!%p1668_p3)
}
  0xc1   :  { %163 = dma.hbm_to_vmem [thread:$0]  %s2092_s16, 16, %s161_s30, [#allocation17]  }
  0xc2   :  { %1672 = dma.done.wait [#allocation3], 256  }
  0xc3   :  { %1673 = vsyncadd [#allocation3], 4294967040 }
  0xc4   :  { %1674 = dma.done.wait [#allocation5], 640  }
  0xc5   :  { %1675 = vsyncadd [#allocation5], 4294966656 }
  0xc6   :  { %1676 = dma.done.wait [#allocation8], 448  }
  0xc7   :  { %1677 = vsyncadd [#allocation8], 4294966848 }
  0xc8   :  { %1678 = dma.done.wait [#allocation11], 1040  }
  0xc9   :  { %1679 = vsyncadd [#allocation11], 4294966256 }
  0xca   :  { %1680 = dma.done.wait [#allocation14], 544  }
  0xcb   :  { %1681 = vsyncadd [#allocation14], 4294966752 }
  0xcc   :  { %1682 = dma.done.wait [#allocation17], 528  }
  0xcd   :  { %1683 = vsyncadd [#allocation17], 4294966768  ;;  %v1699_v0 = vmov 0   ;;  %v197_v1 = vld [vmem:[%s2079_s3] sm:$0xff]  ;;  %v221_v4 = vld [vmem:[#allocation6 + $0x8] sm:$0xff]  ;;  %s2102_s11 = sld [smem:[#allocation25_spill]]  ;;  %v487_v33 = vlaneseq }
  0xce   :  { %1420 = vset.pattern.permute.xlu0 %v1699_v0  ;;  %1421 = vset.pattern.permute.xlu1 %v1699_v0  ;;  %v199_v2 = vld [vmem:[%s2080_s4] sm:$0xff]  ;;  %v198_v5 = vld [vmem:[%s2079_s3 + $0x8] sm:$0xff]  ;;  %v204_v8 = vld [vmem:[#allocation4] sm:$0xff]  ;;  %vm305_vm0 = vcmask 130048   ;;  %vm223_vm1 = vcmask 195584   ;;  %v1700_v32 = vmov 0.0  }
  0xcf   :  { %210 = vperm.xlu0 %1420, %v197_v1   ;;  %391 = vperm.xlu1 %1421, %v199_v2   ;;  %v220_v3 = vld [vmem:[#allocation6] sm:$0xff]  ;;  %v200_v6 = vld [vmem:[%s2080_s4 + $0x8] sm:$0xff]  ;;  %v205_v9 = vld [vmem:[#allocation4 + $0x8] sm:$0xff]  ;;  %v1983_v34 = vshrl.u32 %v487_v33, 7  ;;  %vm1701_vm2 = vmmov 0   ;;  %s1703_s1 = smov 64  }
  0xd0   :  { %v1352_v7 = vpack.c.bf16 %v221_v4, %v220_v3  ;;  %v1356_v10 = vpack.c.bf16 %v205_v9, %v204_v8  ;;  %v222_v11 = vld [vmem:[#allocation6 + $0x10] sm:$0xff]  ;;  %v401_v12 = vld [vmem:[#allocation7] sm:$0xff]  ;;  %v402_v13 = vld [vmem:[#allocation7 + $0x8] sm:$0xff]  ;;  %vm517_vm3 = vcmask 261120   ;;  %v1704_v63 = vmov -1e+09  }
  0xd1   :  { %v1360_v15 = vpack.c.bf16 %v402_v13, %v401_v12  ;;  %v206_v17 = vld [vmem:[#allocation2] sm:$0xff]  ;;  %v207_v22 = vld [vmem:[#allocation2 + $0x8] sm:$0xff]  ;;  %v489_v35 = vsub.s32 0, %v1983_v34  ;;  %v201_v37 = vld [vmem:[#allocation9] sm:$0x7]  ;;  %v497_v38 = vsub.s32 1, %v1983_v34 }
  0xd2   :  { %1353 = vmatprep.subr.bf16.mxu0 %v1352_v7  ;;  %1357 = vmatprep.subr.bf16.mxu1 %v1356_v10  ;;  %v387_v19 = vld [vmem:[%s2078_s2] sm:$0xff]  ;;  %v403_v26 = vld [vmem:[#allocation7 + $0x10] sm:$0xff]  ;;  %v505_v43 = vsub.s32 2, %v1983_v34  ;;  %vm598_vm5 = vcmask 64512   ;;  %s1705_s6 = smov 32  }
  0xd3   :  { %215 = vperm.xlu0 %1420, %v198_v5   ;;  %396 = vperm.xlu1 %1421, %v200_v6   ;;  %v202_v14 = vld [vmem:[%s2102_s11] sm:$0xff]  ;;  %v203_v16 = vld [vmem:[%s2102_s11 + $0x8] sm:$0xff]  ;;  %v490_v42 = vrot.slane %v201_v37, %v489_v35  ;;  %v498_v44 = vrot.slane %v201_v37, %v497_v38 }
  0xd4   :  { %1355 = vmatpush3.bf16.msra.mxu0 %v1352_v7  ;;  %1359 = vmatpush3.bf16.msra.mxu1 %v1356_v10  ;;  %v388_v27 = vld [vmem:[%s2078_s2 + $0x8] sm:$0xff]  ;;  %v506_v51 = vrot.slane %v201_v37, %v505_v43  ;;  %s1702_s2 = smov 96   ;;  %v509_v62 = vld [vmem:[%s2081_s5] sm:$0x3] }
  0xd5   :  { %1293 = vmatprep.subr.mxu0 %v222_v11  ;;  %1302 = vmatprep.mubr.msk.f32.mxu1 %vm305_vm0, %v202_v14  ;;  %vm510_vm4 = vcmp.gt.f32.partialorder %v509_v62, 0.0  ;;  %v867_v13 = vld [vmem:[#allocation10 + $0x8] sm:$0xff]  ;;  %v869_v14 = vld [vmem:[#allocation10 + $0x18] sm:$0xff] }
  0xd6   :  { %1314 = vmatprep.subr.mxu1 %v1700_v32  ;;  %v511_v0 = vsel %vm510_vm4, 0.0, %v1704_v63  ;;  %v859_v34 = vld [vmem:[%s2086_s10 + $0x8] sm:$0xff] }
  0xd7   :  { %1303 = vmatmul.mubr.msk.f32.vlgmr.msra.gmra.mrb[0].mxu1 %vm305_vm0, %v203_v16  ;;  %v596_v1 = vrot.slane %v511_v0, %v489_v35  ;;  %v1364_v16 = vpack.c.bf16 %v869_v14, %v867_v13  ;;  %v769_v33 = vrot.slane %v511_v0, %v497_v38  ;;  %v861_v38 = vld [vmem:[%s2086_s10 + $0x18] sm:$0xff]  ;;  %v1706_v13 = vmov 0.0|0.0  }
  0xd8   :  { %1294 = vmatpush3.msra.mxu0 %v222_v11  ;;  %1316 = vmatprep.mubr.msk.f32.mxu1 %vm1701_vm2, %v1700_v32  ;;  %v1038_v0 = vld [vmem:[#allocation13] sm:$0xff] }
  0xd9   :  { %1361 = vmatprep.subr.bf16.mxu0 %v1360_v15 }
 0x14e   :  { %v211_v18 = vpop.permute.xlu0 %210  ;;  %v392_v21 = vpop.permute.xlu1 %391 }
 0x14f   :  { %v218_v20 = vmul.f32 %v211_v18, %v206_v17  ;;  %v399_v23 = vmul.f32 %v392_v21, %v387_v19  ;;  %v491_v49 = vmul.f32 %v490_v42, %v211_v18  ;;  %v499_v54 = vmul.f32 %v498_v44, %v392_v21  ;;  %v868_v17 = vld [vmem:[#allocation10 + $0x10] sm:$0xff]  ;;  %v871_v18 = vld [vmem:[#allocation10 + $0x28] sm:$0xff]  ;;  %v873_v19 = vld [vmem:[#allocation10 + $0x38] sm:$0xff] }
 0x150   :  { %v1368_v21 = vpack.c.bf16 %v873_v19, %v871_v18 }
 0x151   :  { %1295 = vmatprep.mubr.msk.f32.mxu0 %vm223_vm1, %v218_v20 }
 0x152   :  { %v216_v24 = vpop.permute.xlu0 %215  ;;  %v397_v28 = vpop.permute.xlu1 %396 }
 0x153   :  { %v219_v25 = vmul.f32 %v216_v24, %v207_v22  ;;  %v400_v29 = vmul.f32 %v397_v28, %v388_v27  ;;  %v492_v46 = vmul.f32 %v490_v42, %v216_v24  ;;  %v500_v52 = vmul.f32 %v498_v44, %v397_v28  ;;  %v870_v22 = vld [vmem:[#allocation10 + $0x20] sm:$0xff] }
 0x155   :  { %1296 = vmatmul.mubr.msk.f32.vlgmr.msra.gmra.mrb[0].mxu0 %vm223_vm1, %v219_v25 }
 0x156   :  { %1363 = vmatpush3.bf16.msra.mxu0 %v1360_v15  ;;  %1311 = vmatprep.mubr.msk.f32.mxu0 %vm223_vm1, %v399_v23  ;;  %v866_v15 = vld [vmem:[#allocation10] sm:$0xff]  ;;  %v872_v23 = vld [vmem:[#allocation10 + $0x30] sm:$0xff] }
 0x157   :  { %1309 = vmatprep.subr.mxu0 %v403_v26  ;;  %v1366_v20 = vpack.c.bf16 %v868_v17, %v866_v15  ;;  %v1370_v24 = vpack.c.bf16 %v872_v23, %v870_v22  ;;  %v1145_v22 = vld [vmem:[#allocation16 + $0x8] sm:$0xff] }
 0x15a   :  { %1310 = vmatpush3.msra.mxu0 %v403_v26 }
 0x15b   :  { %1312 = vmatmul.mubr.msk.f32.vlgmr.msra.gmra.mrb[2].mxu0 %vm223_vm1, %v400_v29  ;;  %1365 = vmatprep.subr.bf16.mxu0 %v1364_v16 }
 0x15c   :  { %944 = vmatprep.mubr.f32.mxu0 %v1700_v32  ;;  %1367 = vmatpush1.bf16.msra.mxu0 %v1366_v20 }
 0x15d   :  { %1369 = vmatprep.subr.bf16.mxu0 %v1368_v21  ;;  %v1144_v21 = vld [vmem:[#allocation16] sm:$0xff] }
 0x160   :  { %1371 = vmatpush1.bf16.msra.mxu0 %v1370_v24  ;;  %v1062_v24 = vld [vmem:[#allocation15] sm:$0x3] }
 0x1aa   :  { %v1304_v30 = vpop.f32.mrb[0].mxu1 }
 0x1ab   :  { %v378_v31 = vpop.f32.mrb[1].mxu1 }
 0x228   :  { %v1297_v36 = vpop.f32.mrb[0].mxu0 }
 0x229   :  { %v384_v39 = vadd.f32 %v1304_v30, %v1297_v36  ;;  %v296_v40 = vpop.f32.mrb[1].mxu0 }
 0x22a   :  { %v379_v41 = vadd.f32 %v378_v31, %v296_v40 }
 0x22e   :  { %v1313_v45 = vpop.f32.mrb[2].mxu0 }
 0x22f   :  { %v486_v47 = vadd.f32 %v1313_v45, %v384_v39  ;;  %v476_v48 = vpop.f32.mrb[3].mxu0 }
 0x230   :  { %v485_v50 = vadd.f32 %v476_v48, %v379_v41  ;;  %v860_v48 = vld [vmem:[%s2086_s10 + $0x10] sm:$0xff] }
 0x231   :  { %v494_v53 = vadd.f32 %v492_v46, %v486_v47  ;;  %v858_v46 = vld [vmem:[%s2086_s10] sm:$0xff]  ;;  %v1372_v47 = vpack.c.bf16 %v861_v38, %v859_v34 }
 0x232   :  { %v493_v55 = vadd.f32 %v491_v49, %v485_v50  ;;  %v1374_v49 = vpack.c.bf16 %v860_v48, %v858_v46 }
 0x233   :  { %v502_v56 = vadd.f32 %v500_v52, %v494_v53  ;;  %1373 = vmatprep.subr.bf16.mxu0 %v1372_v47 }
 0x234   :  { %v501_v57 = vadd.f32 %v499_v54, %v493_v55  ;;  %v863_v54 = vld [vmem:[%s2086_s10 + $0x28] sm:$0xff]  ;;  %v865_v55 = vld [vmem:[%s2086_s10 + $0x38] sm:$0xff] }
 0x235   :  { %v1992_v58 = vadd.f32 %v506_v51, %v502_v56  ;;  %v1376_v56 = vpack.c.bf16 %v865_v55, %v863_v54 }
 0x236   :  { %v1994_v59 = vadd.f32 %v506_v51, %v501_v57  ;;  %v862_v57 = vld [vmem:[%s2086_s10 + $0x20] sm:$0xff] }
 0x238   :  { %513 = vrot.lane.b32.xlu1 %v1994_v59, %s1702_s2  ;;  %515 = vrot.lane.b32.xlu0 %v1994_v59, %s1703_s1 }
 0x2aa   :  { %v516_v60 = vpop.permute.xlu0 %515  ;;  %v514_v61 = vpop.permute.xlu1 %513 }
 0x2ab   :  { %1315 = vmatpush3.xpose.msk.msra.mxu1 %vm517_vm3, %v516_v60  ;;  %v864_v60 = vld [vmem:[%s2086_s10 + $0x30] sm:$0xff] }
 0x2ac   :  { %1319 = vmatprep.subr.mxu1 %v1700_v32 }
 0x2ae   :  { %1317 = vmatmul.mubr.msk.f32.vlgmr.msra.gmra.mrb[2].mxu1 %vm517_vm3, %v514_v61  ;;  %v1378_v61 = vpack.c.bf16 %v864_v60, %v862_v57 }
 0x2af   :  { %1321 = vmatprep.mubr.msk.f32.mxu1 %vm1701_vm2, %v1700_v32 }
 0x381   :  { %v588_v2 = vpop.f32.mrb[2].mxu1 }
 0x382   :  { %v592_v3 = vmul.f32 0.17677669, %v588_v2  ;;  %v1318_v4 = vpop.f32.mrb[3].mxu1 }
 0x384   :  { %v597_v5 = vadd.f32 %v596_v1, %v592_v3  ;;  %v1039_v1 = vld [vmem:[#allocation13 + $0x8] sm:$0xff] }
 0x386   :  { %v599_v6 = vsel %vm598_vm5, %v597_v5, -inf }
 0x387   :  { %600 = vmax.xlane.f32.xlu0 %v599_v6  ;;  %v1040_v6 = vld [vmem:[#allocation13 + $0x10] sm:$0xff] }
 0x39d   :  { %610 = vrot.lane.b32.xlu0 %v1994_v59, %s1705_s6 }
 0x3a1   :  { %687 = vrot.lane.b32.xlu0 %v1992_v58, %s1702_s2 }
 0x414   :  { %v601_v7 = vpop.xlane.xlu0 %600 }
 0x415   :  { %v602_v8 = vsub.f32 %v597_v5, %v601_v7  ;;  %v1041_v7 = vld [vmem:[#allocation13 + $0x18] sm:$0xff] }
 0x417   :  { %v603_v9 = vmul.f32 1.442695, %v602_v8 }
 0x418   :  { %v611_v10 = vpop.permute.xlu0 %610 }
 0x419   :  { %1422 = vpow2.f32 %v603_v9  ;;  %1320 = vmatpush3.msra.mxu1 %v611_v10 }
 0x41a   :  { %1324 = vmatprep.subr.mxu1 %v1700_v32 }
 0x41c   :  { %v688_v29 = vpop.permute.xlu0 %687 }
 0x423   :  { %v1423_v11 = vpop.eup %1422 }
 0x424   :  { %v605_v12 = vsel %vm598_vm5, %v1423_v11, 0.0 }
 0x425   :  { %606 = vadd.xlane.f32.xlu1 %v605_v12 }
 0x436   :  { %689 = vrot.lane.b32.xlu1 %v1992_v58, %s1703_s1 }
 0x4b2   :  { %v607_v25 = vpop.xlane.xlu1 %606 }
 0x4b3   :  { %1424 = vrcp.f32 %v607_v25  ;;  %v1384_v25 = vpack.c.bf16 %v1145_v22, %v1144_v21 }
 0x4b6   :  { %v690_v28 = vpop.permute.xlu1 %689 }
 0x4bd   :  { %v1425_v26 = vpop.eup %1424 }
 0x4be   :  { %v609_v27 = vmul.f32 %v1425_v26, %v1423_v11  ;;  %v1146_v26 = vld [vmem:[#allocation16 + $0x10] sm:$0xff] }
 0x4c0   :  { %1322 = vmatmul.mubr.msk.f32.vlgmr.msra.gmra.mrb[4].mxu1 %vm598_vm5, %v609_v27  ;;  %v1147_v27 = vld [vmem:[#allocation16 + $0x18] sm:$0xff] }
 0x4c1   :  { %1325 = vmatpush3.xpose.msk.msra.mxu1 %vm517_vm3, %v690_v28  ;;  %1326 = vmatprep.mubr.msk.f32.mxu1 %vm1701_vm2, %v1700_v32  ;;  %v1387_v28 = vpack.c.bf16 %v1147_v27, %v1146_v26 }
 0x4c2   :  { %1329 = vmatprep.subr.mxu1 %v1700_v32 }
 0x4c4   :  { %1327 = vmatmul.mubr.msk.f32.vlgmr.msra.gmra.mrb[6].mxu1 %vm517_vm3, %v688_v29  ;;  %v1255_v29 = vld [vmem:[#allocation12] ss:$0 sm:$0xff] }
 0x4c5   :  { %1331 = vmatprep.mubr.msk.f32.mxu1 %vm1701_vm2, %v1700_v32 }
 0x593   :  { %v682_v30 = vpop.f32.mrb[4].mxu1 }
 0x594   :  { %v1323_v31 = vpop.f32.mrb[5].mxu1  ;;  %1251 = vmatmul.mubr.msk.f32.vlgmr.msra.gmra.mrb[4].mxu0 %vm517_vm3, %v682_v30 }
 0x595   :  { %950 = vmatprep.mubr.f32.mxu0 %v1700_v32  ;;  %1375 = vmatpush1.bf16.msra.mxu0 %v1374_v49 }
 0x596   :  { %1377 = vmatprep.subr.bf16.mxu0 %v1376_v56 }
 0x597   :  { %v761_v35 = vpop.f32.mrb[6].mxu1 }
 0x598   :  { %v765_v36 = vmul.f32 0.17677669, %v761_v35  ;;  %v1328_v37 = vpop.f32.mrb[7].mxu1 }
 0x599   :  { %1379 = vmatpush1.bf16.msra.mxu0 %v1378_v61 }
 0x59a   :  { %v770_v39 = vadd.f32 %v769_v33, %v765_v36  ;;  %v1257_v36 = vld [vmem:[#allocation18] ss:$0 sm:$0xff] }
 0x59c   :  { %v771_v40 = vsel %vm598_vm5, %v770_v39, -inf }
 0x59d   :  { %772 = vmax.xlane.f32.xlu1 %v771_v40 }
 0x62a   :  { %v773_v41 = vpop.xlane.xlu1 %772 }
 0x62b   :  { %v774_v42 = vsub.f32 %v770_v39, %v773_v41 }
 0x62d   :  { %v775_v43 = vmul.f32 1.442695, %v774_v42 }
 0x62f   :  { %1426 = vpow2.f32 %v775_v43 }
 0x639   :  { %v1427_v44 = vpop.eup %1426 }
 0x63a   :  { %v777_v45 = vsel %vm598_vm5, %v1427_v44, 0.0 }
 0x63b   :  { %778 = vadd.xlane.f32.xlu0 %v777_v45 }
 0x651   :  { %782 = vrot.lane.b32.xlu0 %v1992_v58, %s1705_s6 }
 0x6c8   :  { %v779_v50 = vpop.xlane.xlu0 %778 }
 0x6c9   :  { %1428 = vrcp.f32 %v779_v50 }
 0x6cc   :  { %v783_v51 = vpop.permute.xlu0 %782 }
 0x6cd   :  { %1330 = vmatpush3.msra.mxu1 %v783_v51 }
 0x6ce   :  { %1380 = vmatprep.subr.bf16.mxu1 %v1706_v13 }
 0x6d3   :  { %v1429_v52 = vpop.eup %1428 }
 0x6d4   :  { %v781_v53 = vmul.f32 %v1429_v52, %v1427_v44 }
 0x6d6   :  { %1332 = vmatmul.mubr.msk.f32.vlgmr.msra.gmra.mrb[8].mxu1 %vm598_vm5, %v781_v53 }
 0x6d7   :  { %1338 = vmatprep.mubr.msk.f32.mxu1 %vm1701_vm2, %v1700_v32 }
 0x7a9   :  { %v854_v62 = vpop.f32.mrb[8].mxu1 }
 0x7aa   :  { %v1333_v63 = vpop.f32.mrb[9].mxu1  ;;  %1252 = vmatmul.mubr.msk.f32.gmra.mrb[6].mxu0 %vm517_vm3, %v854_v62 }
 0x7ab   :  { %1025 = vmatprep.mubr.f32.mxu0 %v1700_v32 }
 0x7ae   :  { %1253 = vmatmul.mubr.msk.f32.vlgmr.msra.gmra.mrb[4].mxu0 %vm517_vm3, %v1994_v59 }
 0x7af   :  { %1031 = vmatprep.mubr.f32.mxu0 %v1700_v32 }
 0x7b2   :  { %1254 = vmatmul.mubr.msk.f32.gmra.mrb[6].mxu0 %vm517_vm3, %v1992_v58 }
 0x881   :  { %v1027_v2 = vpop.f32.mrb[4].mxu0 }
 0x882   :  { %v1042_v3 = vmul.f32 %v1038_v0, %v1027_v2  ;;  %v1029_v4 = vpop.f32.mrb[5].mxu0 }
 0x883   :  { %v1043_v5 = vmul.f32 %v1039_v1, %v1029_v4 }
 0x885   :  { %v1046_v8 = vadd.f32 %v1043_v5, %v1042_v3  ;;  %v1033_v9 = vpop.f32.mrb[6].mxu0 }
 0x886   :  { %v1044_v10 = vmul.f32 %v1040_v6, %v1033_v9  ;;  %v1035_v11 = vpop.f32.mrb[7].mxu0 }
 0x887   :  { %v1045_v12 = vmul.f32 %v1041_v7, %v1035_v11  ;;  %1048 = vrot.lane.b32.xlu1 %v1046_v8, %s1703_s1 }
 0x889   :  { %v1047_v59 = vadd.f32 %v1045_v12, %v1044_v10 }
 0x88b   :  { %1050 = vrot.lane.b32.xlu1 %v1047_v59, %s1703_s1 }
 0x8f9   :  { %v1049_v58 = vpop.permute.xlu1 %1048 }
 0x8fa   :  { %v1054_v14 = vadd.f32 %v1049_v58, %v1046_v8 }
 0x8fc   :  { %1056 = vrot.lane.b32.xlu0 %v1054_v14, %s1705_s6 }
 0x8fd   :  { %v1051_v15 = vpop.permute.xlu1 %1050 }
 0x8fe   :  { %v1055_v16 = vadd.f32 %v1051_v15, %v1047_v59 }
 0x900   :  { %1058 = vrot.lane.b32.xlu1 %v1055_v16, %s1705_s6 }
 0x96e   :  { %v1057_v17 = vpop.permute.xlu0 %1056 }
 0x96f   :  { %v1060_v19 = vadd.f32 %v1057_v17, %v1054_v14 }
 0x972   :  { %v1059_v18 = vpop.permute.xlu1 %1058 }
 0x973   :  { %v1061_v20 = vadd.f32 %v1059_v18, %v1055_v16 }
 0x975   :  { %v1381_v23 = vpack.c.bf16 %v1061_v20, %v1060_v19 }
 0x977   :  { %1382 = vmatpush3.bf16.msra.mxu1 %v1381_v23 }
 0x978   :  { %1383 = vmatprep.subr.bf16.mxu1 %v1706_v13 }
 0x97a   :  { %1339 = vmatmul.mubr.msk.f32.vlgmr.msra.gmra.mrb[10].mxu1 %vm305_vm0, %v1062_v24 }
 0x97b   :  { %1385 = vmatpush3.bf16.msra.mxu1 %v1384_v25  ;;  %1349 = vmatprep.mubr.msk.f32.mxu1 %vm1701_vm2, %v1700_v32 }
 0x97c   :  { %1386 = vmatprep.subr.bf16.mxu1 %v1706_v13 }
 0x97f   :  { %1388 = vmatpush3.bf16.msra.mxu1 %v1387_v28 }
 0xa4d   :  { %v1139_v30 = vpop.f32.mrb[10].mxu1 }
 0xa4e   :  { %v1140_v31 = vadd.f32 %v1255_v29, %v1139_v30  ;;  %v1340_v33 = vpop.f32.mrb[11].mxu1 }
 0xa50   :  { %v1143_v35 = vmax.f32 %v1140_v31, 0.0 }
 0xa52   :  { %1350 = vmatmul.mubr.msk.f32.vlgmr.msra.gmra.mrb[12].mxu1 %vm517_vm3, %v1143_v35 }
 0xb25   :  { %v1224_v37 = vpop.f32.mrb[12].mxu1 }
 0xb26   :  { %v1225_v39 = vadd.f32 %v1257_v36, %v1224_v37  ;;  %v1351_v40 = vpop.f32.mrb[13].mxu1 }
 0xb28   :  { %1228 = vst [vmem:[%s2093_s17] sm:$0x3] %v1225_v39 }
 0xb29   :  { %1233 = vsyncpa [#allocation3], 1 }
 0xb2a   :  { %1234 = vsyncpa [#allocation5], 1 }
 0xb2b   :  { %1235 = vsyncpa [#allocation8], 1 }
 0xb2c   :  { %1236 = vsyncpa [#allocation11], 1 }
 0xb2d   :  { %1237 = vsyncpa [#allocation14], 1 }
 0xb2e   :  { %1238 = vsyncpa [#allocation17], 1 }

</bundles_post_ra>
